<compile_context>
chip_gen: v6e
topology: v6e:2x2x1
jax: 0.10.0
libtpu: 0.0.40
codegen_flags: <defaults>
</compile_context>

<pallas_src>
import functools

import jax
import jax.numpy as jnp
from jax.experimental import pallas as pl
from jax.experimental.pallas import tpu as pltpu


def _seed_loss_kernel(pred_ref, tgt_ref, emb_ref, sem_ref, out_ref,
                      loss_acc_ref, cnt_acc_ref, *,
                      label_smoothing, ignore_index, num_classes):
    core = pl.program_id(0)                  # core-split axis ("parallel")
    tile = pl.program_id(1)                  # row-tile reduction axis ("arbitrary")
    last_tile = pl.num_programs(1) - 1

    # ---- per-core accumulator init -------------------------------------------------
    @pl.when(tile == 0)
    def _init():
        loss_acc_ref[...] = jnp.zeros_like(loss_acc_ref)
        cnt_acc_ref[...] = jnp.zeros_like(cnt_acc_ref)

    # ---- label-smoothed cross entropy over this row tile ---------------------------
    logits = pred_ref[...].astype(jnp.float32)                   # [TN, C] f32
    tgt = tgt_ref[...]                                           # [TN, 1] int32

    # log-sum-exp along the class axis
    row_max = jnp.max(logits, axis=-1, keepdims=True)            # [TN, 1]
    sum_exp = jnp.sum(jnp.exp(logits - row_max), axis=-1, keepdims=True)
    lse = row_max + jnp.log(sum_exp)                             # [TN, 1]

    # fused smoothed-NLL:  per_row = lse - sum_c logits_c * ((1-ls)*1{c==tgt} + ls/C)
    col_ids = jax.lax.broadcasted_iota(jnp.int32, (1, num_classes), 1)
    w_hi = jnp.float32(1.0 - label_smoothing + label_smoothing / num_classes)
    w_lo = jnp.float32(label_smoothing / num_classes)
    w = jnp.where(col_ids == tgt, w_hi, w_lo)                    # [TN, C] via broadcast
    per_row = lse - jnp.sum(logits * w, axis=-1, keepdims=True)  # [TN, 1]

    # Select-mask (not multiply): tail rows of a partial last block hold stale
    # logits that may be inf/NaN; their targets are padded to ignore_index.
    valid = tgt != ignore_index                                  # [TN, 1] bool
    loss_acc_ref[...] += jnp.where(valid, per_row, jnp.float32(0.0))
    cnt_acc_ref[...] += jnp.where(valid, jnp.float32(1.0), jnp.float32(0.0))

    # ---- epilogue: one cross-sublane reduce + cosine loss + lane-dense store -------
    @pl.when(tile == last_tile)
    def _finish():
        ce_sum = jnp.sum(loss_acc_ref[...])
        cnt = jnp.sum(cnt_acc_ref[...])

        # cosine-embedding loss: tiny [B, E] compute; counted once (core 0 only)
        x1 = emb_ref[...].astype(jnp.float32)
        x2 = sem_ref[...].astype(jnp.float32)
        dot = jnp.sum(x1 * x2, axis=-1, keepdims=True)
        n1 = jnp.sqrt(jnp.sum(x1 * x1, axis=-1, keepdims=True))
        n2 = jnp.sqrt(jnp.sum(x2 * x2, axis=-1, keepdims=True))
        sim = dot / (n1 * n2 + 1e-12)
        sem = jnp.where(core == 0, jnp.mean(1.0 - sim), jnp.float32(0.0))

        lane = jax.lax.broadcasted_iota(jnp.int32, out_ref.shape, 2)
        out_ref[...] = jnp.where(lane == 0, ce_sum,
                       jnp.where(lane == 1, cnt,
                       jnp.where(lane == 2, sem, jnp.float32(0.0))))


def _num_tensorcores_per_device():
    """2 TensorCores per Pallas device on v4/v5p (megacore) and v7x, else 1."""
    try:
        kind = jax.devices()[0].device_kind.lower()
    except Exception:
        return 1
    return 2 if ("v7" in kind or "v4" in kind or "v5p" in kind) else 1


def _vmem_limit_bytes():
    """Scoped-VMEM request: ~half of physical (64 MiB on v5e/v6e, 32 MiB on v7x)."""
    phys = None
    try:
        phys = int(pltpu.get_tpu_info().vmem_capacity_bytes)
    except Exception:
        phys = None
    if phys is None:
        kind = ""
        try:
            kind = jax.devices()[0].device_kind.lower()
        except Exception:
            pass
        phys = (64 if "v7" in kind else 128) * 1024 * 1024
    return max(32 * 1024 * 1024, min(96 * 1024 * 1024, phys // 2))


def seed_loss(preds, batch, label_smoothing=0.1, row_tile=None):
    embedding_vectors, pred = preds                    # [B, E], [B, T, C]
    labels = batch[1]                                  # [B, L] int
    sem_target = batch[3]                              # [B, E]

    b, t, c = pred.shape
    # PyTorch slices tgt to 1 + batch[2].max(); the module feeds pred with
    # T == 1 + max_len, so slice with the *static* T (no host sync / retrace).
    assert labels.shape[1] >= 1 + t, "labels must cover 1 + pred time dim"
    tgt = labels[:, 1:1 + t]                           # [B, T]

    ignore_index = c + 1                               # pred.shape[1] + 1 after flatten(0,1)

    n = b * t
    pred2d = pred.reshape(n, c)                        # no dtype cast, no pad: streamed as-is
    tgt2d = tgt.reshape(n, 1).astype(jnp.int32)

    # ---- tile sizing: bytes-driven, budgets the f32 temporary expansion ------------
    vmem_limit = _vmem_limit_bytes()
    itemsize = jnp.dtype(pred2d.dtype).itemsize
    if row_tile is None:
        # per tile row: double-buffered input + ~5 live f32 [TN, C] temporaries
        # (cast, exp, one-hot mask, weight, product) + ~4 KiB of lane-padded
        # [TN, 1] columns (targets x2 buffers, accumulators, row stats).
        bytes_per_row = 2 * c * itemsize + 5 * c * 4 + 4096
        row_tile = max(1, (6 * vmem_limit // 10) // bytes_per_row)
    tn = max(8, (int(row_tile) // 8) * 8)
    tn = min(tn, 8192)                                 # bytes-driven cap, not a 1024-row cap
    tn = min(tn, ((n + 7) // 8) * 8)                   # don't tile wider than the data

    num_tiles = pl.cdiv(n, tn)
    ncores = 2 if (_num_tensorcores_per_device() >= 2 and num_tiles >= 2) else 1
    tiles_per_core = pl.cdiv(num_tiles, ncores)

    # Pad only the tiny target column so every (core, tile) slot reads defined
    # targets; logits are never padded (partial / duplicate tiles are masked).
    n_tgt = ncores * tiles_per_core * tn
    if n_tgt != n:
        tgt2d = jnp.pad(tgt2d, ((0, n_tgt - n), (0, 0)), constant_values=ignore_index)

    if ncores * tiles_per_core == num_tiles:
        def logits_map(cc, tt):
            return (cc * tiles_per_core + tt, 0)
    else:
        # core 1's trailing slot(s) re-read the last real tile; their targets map to
        # the ignore-padded region so their contribution is exactly zero.
        def logits_map(cc, tt):
            return (jnp.minimum(cc * tiles_per_core + tt, num_tiles - 1), 0)

    def tgt_map(cc, tt):
        return (cc * tiles_per_core + tt, 0)

    kernel = functools.partial(
        _seed_loss_kernel,
        label_smoothing=float(label_smoothing),
        ignore_index=ignore_index,
        num_classes=c,
    )

    partials = pl.pallas_call(
        kernel,
        out_shape=jax.ShapeDtypeStruct((ncores, 8, 128), jnp.float32),
        grid=(ncores, tiles_per_core),
        in_specs=[
            # logits row tile: double-buffered, full-C last dim (== array dim)
            pl.BlockSpec((tn, c), logits_map),
            # target column tile (tiny per-step DMA, hidden under the logits stream)
            pl.BlockSpec((tn, 1), tgt_map),
            # embeddings / semantic targets: constant index -> fetched once, resident
            pl.BlockSpec(embedding_vectors.shape, lambda cc, tt: (0, 0)),
            pl.BlockSpec(sem_target.shape, lambda cc, tt: (0, 0)),
        ],
        out_specs=pl.BlockSpec((1, 8, 128), lambda cc, tt: (cc, 0, 0)),
        scratch_shapes=[pltpu.VMEM((tn, 1), jnp.float32),   # running smoothed-NLL sum
                        pltpu.VMEM((tn, 1), jnp.float32)],  # running valid-row count
        compiler_params=pltpu.CompilerParams(
            dimension_semantics=("parallel", "arbitrary"),
            vmem_limit_bytes=int(vmem_limit),
        ),
    )(pred2d, tgt2d, embedding_vectors, sem_target)

    ce_sum = jnp.sum(partials[:, 0, 0])
    cnt = jnp.sum(partials[:, 0, 1])
    sem_loss = jnp.sum(partials[:, 0, 2])
    # NOTE: cnt == 0 (every target ignored) yields NaN, matching F.cross_entropy.
    rec_loss = ce_sum / cnt
    return {
        'loss': rec_loss + 0.1 * sem_loss,
        'rec_loss': rec_loss,
        'sem_loss': sem_loss,
    }


def _ref_losses(pred2d, tgt1d, emb, sem, label_smoothing, ignore_index):
    """Plain-JAX reference mirroring the PyTorch forward (for sanity check)."""
    logits = pred2d.astype(jnp.float32)
    c = logits.shape[1]
    lse = jax.nn.logsumexp(logits, axis=-1)
    safe_t = jnp.clip(tgt1d, 0, c - 1)
    tgt_logit = jnp.take_along_axis(logits, safe_t[:, None], axis=-1)[:, 0]
    nll = lse - tgt_logit
    smooth = lse - jnp.mean(logits, axis=-1)
    per = (1.0 - label_smoothing) * nll + label_smoothing * smooth
    valid = (tgt1d != ignore_index).astype(jnp.float32)
    rec = jnp.sum(per * valid) / jnp.sum(valid)
    x1 = emb.astype(jnp.float32)
    x2 = sem.astype(jnp.float32)
    sim = jnp.sum(x1 * x2, -1) / (
        jnp.linalg.norm(x1, axis=-1) * jnp.linalg.norm(x2, axis=-1) + 1e-12)
    return rec, jnp.mean(1.0 - sim)


if __name__ == "__main__":
    key = jax.random.PRNGKey(0)
    keys = jax.random.split(key, 8)

    def run_case(B, T, C, E, L, lengths, row_tile, ks):
        k1, k2, k3, k4 = ks
        pred = jax.random.normal(k1, (B, T, C), dtype=jnp.float32)
        labels = jax.random.randint(k2, (B, L), 0, C).astype(jnp.int32)
        pos = jnp.arange(L)[None, :]
        labels = jnp.where(pos > (lengths[:, None] + 1), C + 1, labels)  # pad -> ignore_index
        emb = jax.random.normal(k3, (B, E), dtype=jnp.float32)
        sem = jax.random.normal(k4, (B, E), dtype=jnp.float32)

        out = seed_loss((emb, pred), (None, labels, lengths, sem), row_tile=row_tile)
        jax.block_until_ready(out['loss'])

        tgt_flat = labels[:, 1:1 + T].reshape(-1)
        rec_ref, sem_ref_v = _ref_losses(pred.reshape(-1, C), tgt_flat, emb, sem, 0.1, C + 1)
        assert jnp.allclose(out['rec_loss'], rec_ref, atol=1e-4, rtol=1e-4), (out['rec_loss'], rec_ref)
        assert jnp.allclose(out['sem_loss'], sem_ref_v, atol=1e-5, rtol=1e-5), (out['sem_loss'], sem_ref_v)
        assert jnp.allclose(out['loss'], rec_ref + 0.1 * sem_ref_v, atol=1e-4, rtol=1e-4)

    # Case 1: explicit row tile with N=24 not a multiple of tn=16 -> exercises the
    # partial-last-block + ignore-padded-target masking and the multi-tile pipeline.
    lengths3 = jnp.array([5, 7, 7], dtype=jnp.int32)   # max = 7 -> T = 1 + 7 = 8
    run_case(B=3, T=8, C=128, E=256, L=12, lengths=lengths3, row_tile=16, ks=keys[0:4])

    # Case 2: auto tile size + class count not a multiple of 128 (full-C block path).
    lengths2 = jnp.array([5, 7], dtype=jnp.int32)
    run_case(B=2, T=8, C=100, E=256, L=12, lengths=lengths2, row_tile=None, ks=keys[4:8])

    print("KERNEL_OK")
</pallas_src>

<mosaic_0001>
module attributes {stable_mosaic.version = 11 : i64} {
  func.func @_seed_loss_kernel(%arg0: i32, %arg1: i32, %arg2: memref<16x128xf32, #tpu.memory_space<vmem>>, %arg3: memref<16x1xi32, #tpu.memory_space<vmem>>, %arg4: memref<3x256xf32, #tpu.memory_space<vmem>>, %arg5: memref<3x256xf32, #tpu.memory_space<vmem>>, %arg6: memref<1x8x128xf32, #tpu.memory_space<vmem>>, %arg7: memref<16x1xf32, #tpu.memory_space<vmem>>, %arg8: memref<16x1xf32, #tpu.memory_space<vmem>>) attributes {dimension_semantics = [#tpu.dimension_semantics<parallel>, #tpu.dimension_semantics<arbitrary>], iteration_bounds = array<i64: 1, 2>, scalar_prefetch = 0 : i64, scratch_operands = 2 : i64, tpu.core_type = #tpu.core_type<tc>, window_params = [{transform_indices = @transform_0, window_bounds = array<i64: 16, 128>}, {transform_indices = @transform_1, window_bounds = array<i64: 16, 1>}, {pipeline_mode = #tpu.pipeline_mode<synchronous>, transform_indices = @transform_2, window_bounds = array<i64: 3, 256>}, {pipeline_mode = #tpu.pipeline_mode<synchronous>, transform_indices = @transform_3, window_bounds = array<i64: 3, 256>}, {transform_indices = @transform_4, window_bounds = array<i64: 1, 8, 128>}]} {
    %c0_i32 = arith.constant 0 : i32
    %0 = arith.cmpi eq, %arg1, %c0_i32 : i32
    %1 = arith.extui %0 : i1 to i32
    %c0_i32_0 = arith.constant 0 : i32
    %2 = arith.cmpi ne, %1, %c0_i32_0 : i32
    scf.if %2 {
      %cst_20 = arith.constant 0.000000e+00 : f32
      %41 = vector.broadcast %cst_20 : f32 to vector<16x1xf32>
      %c0_21 = arith.constant 0 : index
      %c0_22 = arith.constant 0 : index
      %42 = vector.load %arg7[%c0_21, %c0_22] : memref<16x1xf32, #tpu.memory_space<vmem>>, vector<16x1xf32>
      tpu.vector_store %arg7[%c0_21, %c0_22], %41 {strides = array<i32>} : memref<16x1xf32, #tpu.memory_space<vmem>>, vector<16x1xf32>,
      %cst_23 = arith.constant 0.000000e+00 : f32
      %43 = vector.broadcast %cst_23 : f32 to vector<16x1xf32>
      %c0_24 = arith.constant 0 : index
      %c0_25 = arith.constant 0 : index
      %44 = vector.load %arg8[%c0_24, %c0_25] : memref<16x1xf32, #tpu.memory_space<vmem>>, vector<16x1xf32>
      tpu.vector_store %arg8[%c0_24, %c0_25], %43 {strides = array<i32>} : memref<16x1xf32, #tpu.memory_space<vmem>>, vector<16x1xf32>,
    } else {
    }
    %c0 = arith.constant 0 : index
    %c0_1 = arith.constant 0 : index
    %3 = vector.load %arg2[%c0, %c0_1] : memref<16x128xf32, #tpu.memory_space<vmem>>, vector<16x128xf32>
    %c0_2 = arith.constant 0 : index
    %c0_3 = arith.constant 0 : index
    %4 = vector.load %arg3[%c0_2, %c0_3] : memref<16x1xi32, #tpu.memory_space<vmem>>, vector<16x1xi32>
    %cst = arith.constant dense<0xFF800000> : vector<16xf32>
    %5 = vector.multi_reduction <maximumf>, %3, %cst [1] : vector<16x128xf32> to vector<16xf32>
    %6 = vector.shape_cast %5 : vector<16xf32> to vector<16x1xf32>
    %7 = vector.broadcast %6 : vector<16x1xf32> to vector<16x128xf32>
    %8 = arith.subf %3, %7 : vector<16x128xf32>
    %9 = math.exp %8 : vector<16x128xf32>
    %cst_4 = arith.constant dense<0.000000e+00> : vector<16xf32>
    %10 = vector.multi_reduction <add>, %9, %cst_4 [1] : vector<16x128xf32> to vector<16xf32>
    %11 = vector.shape_cast %10 : vector<16xf32> to vector<16x1xf32>
    %12 = math.log %11 : vector<16x1xf32>
    %13 = arith.addf %6, %12 : vector<16x1xf32>
    %14 = tpu.iota {dimensions = array<i32: 1>} : vector<1x128xi32>
    %15 = vector.broadcast %14 : vector<1x128xi32> to vector<16x128xi32>
    %16 = vector.broadcast %4 : vector<16x1xi32> to vector<16x128xi32>
    %17 = arith.cmpi eq, %15, %16 : vector<16x128xi32>
    %cst_5 = arith.constant 0.900781273 : f32
    %cst_6 = arith.constant 7.812500e-04 : f32
    %18 = vector.broadcast %cst_5 : f32 to vector<16x128xf32>
    %19 = vector.broadcast %cst_6 : f32 to vector<16x128xf32>
    %20 = arith.select %17, %18, %19 : vector<16x128xi1>, vector<16x128xf32>
    %21 = arith.mulf %3, %20 : vector<16x128xf32>
    %cst_7 = arith.constant dense<0.000000e+00> : vector<16xf32>
    %22 = vector.multi_reduction <add>, %21, %cst_7 [1] : vector<16x128xf32> to vector<16xf32>
    %23 = vector.shape_cast %22 : vector<16xf32> to vector<16x1xf32>
    %24 = arith.subf %13, %23 : vector<16x1xf32>
    %c129_i32 = arith.constant 129 : i32
    %25 = vector.broadcast %c129_i32 : i32 to vector<16x1xi32>
    %26 = arith.cmpi ne, %4, %25 : vector<16x1xi32>
    %c0_8 = arith.constant 0 : index
    %c0_9 = arith.constant 0 : index
    %27 = vector.load %arg7[%c0_8, %c0_9] : memref<16x1xf32, #tpu.memory_space<vmem>>, vector<16x1xf32>
    %cst_10 = arith.constant 0.000000e+00 : f32
    %28 = vector.broadcast %cst_10 : f32 to vector<16x1xf32>
    %29 = arith.select %26, %24, %28 : vector<16x1xi1>, vector<16x1xf32>
    %30 = arith.addf %27, %29 : vector<16x1xf32>
    %c0_11 = arith.constant 0 : index
    %c0_12 = arith.constant 0 : index
    %31 = vector.load %arg7[%c0_11, %c0_12] : memref<16x1xf32, #tpu.memory_space<vmem>>, vector<16x1xf32>
    tpu.vector_store %arg7[%c0_11, %c0_12], %30 {strides = array<i32>} : memref<16x1xf32, #tpu.memory_space<vmem>>, vector<16x1xf32>,
    %c0_13 = arith.constant 0 : index
    %c0_14 = arith.constant 0 : index
    %32 = vector.load %arg8[%c0_13, %c0_14] : memref<16x1xf32, #tpu.memory_space<vmem>>, vector<16x1xf32>
    %cst_15 = arith.constant 1.000000e+00 : f32
    %cst_16 = arith.constant 0.000000e+00 : f32
    %33 = vector.broadcast %cst_15 : f32 to vector<16x1xf32>
    %34 = vector.broadcast %cst_16 : f32 to vector<16x1xf32>
    %35 = arith.select %26, %33, %34 : vector<16x1xi1>, vector<16x1xf32>
    %36 = arith.addf %32, %35 : vector<16x1xf32>
    %c0_17 = arith.constant 0 : index
    %c0_18 = arith.constant 0 : index
    %37 = vector.load %arg8[%c0_17, %c0_18] : memref<16x1xf32, #tpu.memory_space<vmem>>, vector<16x1xf32>
    tpu.vector_store %arg8[%c0_17, %c0_18], %36 {strides = array<i32>} : memref<16x1xf32, #tpu.memory_space<vmem>>, vector<16x1xf32>,
    %c1_i32 = arith.constant 1 : i32
    %38 = arith.cmpi eq, %arg1, %c1_i32 : i32
    %39 = arith.extui %38 : i1 to i32
    %c0_i32_19 = arith.constant 0 : i32
    %40 = arith.cmpi ne, %39, %c0_i32_19 : i32
    scf.if %40 {
      %c0_20 = arith.constant 0 : index
      %c0_21 = arith.constant 0 : index
      %41 = vector.load %arg7[%c0_20, %c0_21] : memref<16x1xf32, #tpu.memory_space<vmem>>, vector<16x1xf32>
      %42 = vector.shape_cast %41 : vector<16x1xf32> to vector<1x16x1xf32>
      %cst_22 = arith.constant dense<0.000000e+00> : vector<1xf32>
      %43 = vector.multi_reduction <add>, %42, %cst_22 [1, 2] : vector<1x16x1xf32> to vector<1xf32>
      %44 = vector.shape_cast %43 : vector<1xf32> to vector<1x1x1xf32>
      %45 = vector.extract %44[0, 0, 0] : f32 from vector<1x1x1xf32>
      %c0_23 = arith.constant 0 : index
      %c0_24 = arith.constant 0 : index
      %46 = vector.load %arg8[%c0_23, %c0_24] : memref<16x1xf32, #tpu.memory_space<vmem>>, vector<16x1xf32>
      %47 = vector.shape_cast %46 : vector<16x1xf32> to vector<1x16x1xf32>
      %cst_25 = arith.constant dense<0.000000e+00> : vector<1xf32>
      %48 = vector.multi_reduction <add>, %47, %cst_25 [1, 2] : vector<1x16x1xf32> to vector<1xf32>
      %49 = vector.shape_cast %48 : vector<1xf32> to vector<1x1x1xf32>
      %50 = vector.extract %49[0, 0, 0] : f32 from vector<1x1x1xf32>
      %c0_26 = arith.constant 0 : index
      %c0_27 = arith.constant 0 : index
      %51 = vector.load %arg4[%c0_26, %c0_27] : memref<3x256xf32, #tpu.memory_space<vmem>>, vector<3x256xf32>
      %c0_28 = arith.constant 0 : index
      %c0_29 = arith.constant 0 : index
      %52 = vector.load %arg5[%c0_28, %c0_29] : memref<3x256xf32, #tpu.memory_space<vmem>>, vector<3x256xf32>
      %53 = arith.mulf %51, %52 : vector<3x256xf32>
      %cst_30 = arith.constant dense<0.000000e+00> : vector<3xf32>
      %54 = vector.multi_reduction <add>, %53, %cst_30 [1] : vector<3x256xf32> to vector<3xf32>
      %55 = vector.shape_cast %54 : vector<3xf32> to vector<3x1xf32>
      %56 = arith.mulf %51, %51 : vector<3x256xf32>
      %cst_31 = arith.constant dense<0.000000e+00> : vector<3xf32>
      %57 = vector.multi_reduction <add>, %56, %cst_31 [1] : vector<3x256xf32> to vector<3xf32>
      %58 = vector.shape_cast %57 : vector<3xf32> to vector<3x1xf32>
      %59 = math.sqrt %58 : vector<3x1xf32>
      %60 = arith.mulf %52, %52 : vector<3x256xf32>
      %cst_32 = arith.constant dense<0.000000e+00> : vector<3xf32>
      %61 = vector.multi_reduction <add>, %60, %cst_32 [1] : vector<3x256xf32> to vector<3xf32>
      %62 = vector.shape_cast %61 : vector<3xf32> to vector<3x1xf32>
      %63 = math.sqrt %62 : vector<3x1xf32>
      %64 = arith.mulf %59, %63 : vector<3x1xf32>
      %cst_33 = arith.constant 9.99999996E-13 : f32
      %65 = vector.broadcast %cst_33 : f32 to vector<3x1xf32>
      %66 = arith.addf %64, %65 : vector<3x1xf32>
      %67 = arith.divf %55, %66 : vector<3x1xf32>
      %c0_i32_34 = arith.constant 0 : i32
      %68 = arith.cmpi eq, %arg0, %c0_i32_34 : i32
      %cst_35 = arith.constant 1.000000e+00 : f32
      %69 = vector.broadcast %cst_35 : f32 to vector<3x1xf32>
      %70 = arith.subf %69, %67 : vector<3x1xf32>
      %71 = vector.shape_cast %70 : vector<3x1xf32> to vector<1x3x1xf32>
      %cst_36 = arith.constant dense<0.000000e+00> : vector<1xf32>
      %72 = vector.multi_reduction <add>, %71, %cst_36 [1, 2] : vector<1x3x1xf32> to vector<1xf32>
      %73 = vector.shape_cast %72 : vector<1xf32> to vector<1x1x1xf32>
      %74 = vector.extract %73[0, 0, 0] : f32 from vector<1x1x1xf32>
      %cst_37 = arith.constant 3.000000e+00 : f32
      %75 = arith.divf %74, %cst_37 : f32
      %cst_38 = arith.constant 0.000000e+00 : f32
      %76 = arith.select %68, %75, %cst_38 : f32
      %77 = tpu.iota {dimensions = array<i32: 2>} : vector<1x8x128xi32>
      %c0_i32_39 = arith.constant 0 : i32
      %78 = vector.broadcast %c0_i32_39 : i32 to vector<1x8x128xi32>
      %79 = arith.cmpi eq, %77, %78 : vector<1x8x128xi32>
      %c1_i32_40 = arith.constant 1 : i32
      %80 = vector.broadcast %c1_i32_40 : i32 to vector<1x8x128xi32>
      %81 = arith.cmpi eq, %77, %80 : vector<1x8x128xi32>
      %c2_i32 = arith.constant 2 : i32
      %82 = vector.broadcast %c2_i32 : i32 to vector<1x8x128xi32>
      %83 = arith.cmpi eq, %77, %82 : vector<1x8x128xi32>
      %cst_41 = arith.constant 0.000000e+00 : f32
      %84 = vector.broadcast %76 : f32 to vector<1x8x128xf32>
      %85 = vector.broadcast %cst_41 : f32 to vector<1x8x128xf32>
      %86 = arith.select %83, %84, %85 : vector<1x8x128xi1>, vector<1x8x128xf32>
      %87 = vector.broadcast %50 : f32 to vector<1x8x128xf32>
      %88 = arith.select %81, %87, %86 : vector<1x8x128xi1>, vector<1x8x128xf32>
      %89 = vector.broadcast %45 : f32 to vector<1x8x128xf32>
      %90 = arith.select %79, %89, %88 : vector<1x8x128xi1>, vector<1x8x128xf32>
      %c0_42 = arith.constant 0 : index
      %c0_43 = arith.constant 0 : index
      %c0_44 = arith.constant 0 : index
      %91 = vector.load %arg6[%c0_42, %c0_43, %c0_44] : memref<1x8x128xf32, #tpu.memory_space<vmem>>, vector<1x8x128xf32>
      tpu.vector_store %arg6[%c0_42, %c0_43, %c0_44], %90 {strides = array<i32>} : memref<1x8x128xf32, #tpu.memory_space<vmem>>, vector<1x8x128xf32>,
    } else {
    }
    return
  }
  func.func @transform_0(%arg0: i32, %arg1: i32) -> (i32, i32) {
    %c2_i32 = arith.constant 2 : i32
    %0 = arith.muli %arg0, %c2_i32 : i32
    %1 = arith.addi %0, %arg1 : i32
    %c0_i32 = arith.constant 0 : i32
    %c0_i32_0 = arith.constant 0 : i32
    return %1, %c0_i32 : i32, i32
  }
  func.func @transform_1(%arg0: i32, %arg1: i32) -> (i32, i32) {
    %c2_i32 = arith.constant 2 : i32
    %0 = arith.muli %arg0, %c2_i32 : i32
    %1 = arith.addi %0, %arg1 : i32
    %c0_i32 = arith.constant 0 : i32
    %c0_i32_0 = arith.constant 0 : i32
    return %1, %c0_i32 : i32, i32
  }
  func.func @transform_2(%arg0: i32, %arg1: i32) -> (i32, i32) {
    %c0_i32 = arith.constant 0 : i32
    %c0_i32_0 = arith.constant 0 : i32
    %c0_i32_1 = arith.constant 0 : i32
    return %c0_i32, %c0_i32_0 : i32, i32
  }
  func.func @transform_3(%arg0: i32, %arg1: i32) -> (i32, i32) {
    %c0_i32 = arith.constant 0 : i32
    %c0_i32_0 = arith.constant 0 : i32
    %c0_i32_1 = arith.constant 0 : i32
    return %c0_i32, %c0_i32_0 : i32, i32
  }
  func.func @transform_4(%arg0: i32, %arg1: i32) -> (i32, i32, i32) {
    %c0_i32 = arith.constant 0 : i32
    %c0_i32_0 = arith.constant 0 : i32
    %c0_i32_1 = arith.constant 0 : i32
    return %arg0, %c0_i32, %c0_i32_0 : i32, i32, i32
  }
}

</mosaic_0001>

<bundles_post_ra>
// kernel: tpu_custom_call.1
= control target key start
LH: loop header
LB: loop body
LE: loop exit
PB: predicated region body
PF: predicated region fallthrough
CT: control target
= control target key end

     0   :  { %9 = vsyncpa [#allocation5], 0  ;;  %s846_s0 = inlined_call_operand.vmem [shape: f32[24,128], index: 0, kind: input, shape index: {}]   ;;  %s847_s1 = inlined_call_operand.vmem [shape: s32[32,1], index: 1, kind: input, shape index: {}]   ;;  %s848_s2 = inlined_call_operand.vmem [shape: f32[3,256], index: 2, kind: input, shape index: {}]   ;;  %s849_s3 = inlined_call_operand.hbm [shape: f32[3,256], index: 3, kind: input, shape index: {}]   ;;  %s850_s4 = inlined_call_operand.hbm [shape: f32[1,8,128], index: 4, kind: output, shape index: {}]  }
   0x1   :  { %10 = vsyncpa [#allocation6], 0  ;;  %s745_s15 = smov 0   ;;  %s747_s16 = smov 0  }
   0x2   :  { %s749_s17 = smov 0  }
   0x3 LB: > { %s548_s18 = sadd.s32 4294967295, %s712_s17   ;;  %s25_s19 = sadd.s32 1, %s708_s16  ;;  %s712_s17 = sphi %s749_s17, %s16_s17   ;;  %s708_s16 = sphi %s747_s16, %s855_s16   ;;  %s704_s15 = sphi %s745_s15, %s854_s15  }
   0x4   : > { %p26_p0 = scmp.ge.s32.totalorder %s25_s19, 2  ;;  %p549_p1 = scmp.ge.s32.totalorder %s712_s17, 1 }
   0x5   : > { %p161_p2 = scmp.lt.s32.totalorder %s712_s17, 3  ;;  %p772_p4 = scmp.eq.s32.totalorder %s548_s18, 0 }
   0x6   : > { %s857_s19 = smov (%p26_p0, %s25_s19), 0  ;;  %s714_s22 = smov [#allocation4]  }
   0x7   : > { %p766_p3 = pnand %p549_p1, %p161_p2  ;;  %s177_s23 = sshll.u32 %s714_s22, 4  ;;  %s178_s23 = int_to_ptr.vmem [resolvable:$true] %s177_s23 }
   0x8   : > { %s643_s24 = scalar_lea.vmem %s178_s23, 128  ;;  %p651_p11 = scmp.lt.s32.totalorder %s178_s23, %s178_s23 }
   0x9   : > { %p578_p5 = pneg %p766_p3  ;;  %p644_p8 = scmp.ne.s32.totalorder %s178_s23, %s643_s24 }
   0xa   : > { %p652_p12 = scmp.lt.s32.totalorder %s643_s24, %s643_s24 }
   0xb   : > { %p579_p6 = pnand %p772_p4, %p578_p5 }
   0xc   : > { %p653_p13 = por %p652_p12, %p651_p11 }
   0xd   : > { %p634_p7 = pneg %p579_p6 }
   0xf   : > { %p646_p9 = pnand %p644_p8, %p634_p7 }
  0x11   : > { %p647_p10 = pneg %p646_p9 }
  0x13   : > { %p654_p0 = pnand %p653_p13, %p647_p10 }
  0x15   : > { %657 = shalt.err (!%p654_p0)
}
  0x16   : > { %581 = dma.hbm_to_vmem [thread:$0]  (!%p579_p6), %s849_s3, 128, %s178_s23, [#allocation5]  }
  0x17   : > { %224 = sbr.rel (%p766_p3) target bundleno = 775 (0x307), region = 36 }
  0x1c   : > { %695 = dma.done.wait (%p772_p4), [#allocation5], 128  }
  0x1d   : > { %697 = vsyncadd (%p772_p4), [#allocation5], 4294967168  ;;  %s554_s27 = sshll.u32 %s704_s15, 1  ;;  %p558_p3 = scmp.ne.s32.totalorder %s704_s15, 0 }
  0x1e   : > { %p265_p1 = scmp.lt.s32.totalorder %s554_s27, 2  ;;  %p279_p2 = scmp.lt.s32.totalorder %s554_s27, 3 }
  0x1f   : > { %289 = sbr.rel (%p558_p3) target bundleno = 39 (0x27), region = 44 }
  0x20   : > { %s266_s28 = scalar_select %p265_p1, %s554_s27, 2 }
  0x21   : > { %s859_s27 = smov (!%p279_p2, %s554_s27), 3 }
  0x22   : > { %s555_s29 = sshll.u32 %s266_s28, 3  ;;  %s557_s7 = sshll.u32 %s859_s27, 3 }
  0x23   : > { %s268_s6 = scalar_lea.vmem %s846_s0, %s555_s29  ;;  %s282_s10 = scalar_lea.vmem %s847_s1, %s557_s7 }
  0x24   : > { %vm290_vm0 = vcmask 7168   ;;  %v715_v0 = vmov 0.0  }
  0x25   : > { %291 = vst.msk [vmem:[#allocation2] sm:$0xff] %vm290_vm0, %v715_v0  ;;  %292 = vst.msk [vmem:[#allocation2 + $0x8] sm:$0xff] %vm290_vm0, %v715_v0 }
  0x26   : > { %293 = vst.msk [vmem:[#allocation3] sm:$0xff] %vm290_vm0, %v715_v0  ;;  %294 = vst.msk [vmem:[#allocation3 + $0x8] sm:$0xff] %vm290_vm0, %v715_v0 }
  0x27 PF: > { %v295_v1 = vld [vmem:[%s268_s6] sm:$0xff]  ;;  %v716_v3 = vmov 0   ;;  %v298_v5 = vld [vmem:[%s282_s10 + $0x8] sm:$0xff]  ;;  %v717_v8 = vmov 0.0   ;;  %vm347_vm3 = vcmask 7168   ;;  %v319_v18 = vlaneseq  ;;  %p559_p4 = scmp.ne.s32.totalorder %s704_s15, 1 }
  0x28   : > { %v297_v2 = vld [vmem:[%s282_s10] sm:$0xff]  ;;  %299 = vmax.xlane.f32.xlu0 %v295_v1  ;;  %616 = vset.pattern.permute.xlu1 %v716_v3  ;;  %v296_v7 = vld [vmem:[%s268_s6 + $0x8] sm:$0xff]  ;;  %vm340_vm2 = vcmp.ne.s32.totalorder %v298_v5, 129  ;;  %v718_v23 = vmov 0.00078125  }
  0x29   : > { %vm339_vm1 = vcmp.ne.s32.totalorder %v297_v2, 129  ;;  %322 = vperm.xlu1 %616, %v297_v2   ;;  %617 = vset.pattern.permute.xlu0 %v716_v3  ;;  %v353_v11 = vsel %vm340_vm2, 1.0, %v717_v8  ;;  %v801_v21 = vand.u32 127, %v319_v18 }
  0x2a   : > { %v352_v9 = vsel %vm339_vm1, 1.0, %v717_v8 }
  0x2c   : > { %301 = vmax.xlane.f32.xlu0 %v296_v7  ;;  %v341_v38 = vld [vmem:[#allocation2] sm:$0xff]  ;;  %v342_v44 = vld [vmem:[#allocation2 + $0x8] sm:$0xff] }
  0x2d   : > { %v350_v4 = vld [vmem:[#allocation3] sm:$0xff]  ;;  %v351_v6 = vld [vmem:[#allocation3 + $0x8] sm:$0xff]  ;;  %325 = vperm.xlu1 %616, %v298_v5  }
  0x2e   : > { %v354_v10 = vadd.f32 %v352_v9, %v350_v4  ;;  %v355_v12 = vadd.f32 %v353_v11, %v351_v6 }
  0x30   : > { %356 = vst.msk [vmem:[#allocation3] sm:$0xff] %vm347_vm3, %v354_v10  ;;  %357 = vst.msk [vmem:[#allocation3 + $0x8] sm:$0xff] %vm347_vm3, %v355_v12 }
  0xa4   : > { %v323_v20 = vpop.permute.xlu1 %322 }
  0xa5   : > { %vm327_vm4 = vcmp.eq.s32.totalorder %v801_v21, %v323_v20 }
  0xa6   : > { %v329_v24 = vsel %vm327_vm4, 0.9007813, %v718_v23 }
  0xa7   : > { %v331_v26 = vmul.f32 %v329_v24, %v295_v1 }
  0xa8   : > { %v326_v22 = vpop.permute.xlu1 %325 }
  0xa9   : > { %vm328_vm5 = vcmp.eq.s32.totalorder %v801_v21, %v326_v22 }
  0xaa   : > { %v330_v27 = vsel %vm328_vm5, 0.9007813, %v718_v23 }
  0xab   : > { %v332_v29 = vmul.f32 %v330_v27, %v296_v7 }
  0xb1   : > { %v300_v13 = vpop.xlane.xlu0 %299 }
  0xb2   : > { %v303_v14 = vsub.f32 %v295_v1, %v300_v13 }
  0xb4   : > { %v305_v15 = vmul.f32 1.442695, %v303_v14 }
  0xb5   : > { %v302_v16 = vpop.xlane.xlu0 %301 }
  0xb6   : > { %618 = vpow2.f32 %v305_v15  ;;  %v304_v17 = vsub.f32 %v296_v7, %v302_v16 }
  0xb8   : > { %v307_v19 = vmul.f32 1.442695, %v304_v17 }
  0xba   : > { %620 = vpow2.f32 %v307_v19 }
  0xc3   : > { %v619_v25 = vpop.eup %618 }
  0xc4   : > { %309 = vadd.xlane.f32.xlu0 %v619_v25 }
  0xc7   : > { %v621_v28 = vpop.eup %620 }
  0xc8   : > { %311 = vadd.xlane.f32.xlu1 %v621_v28  ;;  %333 = vadd.xlane.f32.xlu0 %v331_v26 }
  0xcc   : > { %335 = vadd.xlane.f32.xlu0 %v332_v29 }
 0x14d   : > { %v310_v30 = vpop.xlane.xlu0 %309 }
 0x14e   : > { %622 = vlog2.f32 %v310_v30 }
 0x151   : > { %v312_v31 = vpop.xlane.xlu1 %311  ;;  %v334_v34 = vpop.xlane.xlu0 %333 }
 0x152   : > { %624 = vlog2.f32 %v312_v31 }
 0x155   : > { %v336_v43 = vpop.xlane.xlu0 %335 }
 0x15b   : > { %v623_v32 = vpop.eup %622 }
 0x15c   : > { %v314_v33 = vmul.f32 0.6931472, %v623_v32 }
 0x15e   : > { %v317_v35 = vadd.f32 %v314_v33, %v300_v13 }
 0x15f   : > { %v625_v36 = vpop.eup %624 }
 0x160   : > { %v316_v37 = vmul.f32 0.6931472, %v625_v36  ;;  %v337_v39 = vsub.f32 %v317_v35, %v334_v34 }
 0x162   : > { %v343_v40 = vsel %vm339_vm1, %v337_v39, 0.0  ;;  %v318_v41 = vadd.f32 %v316_v37, %v302_v16 }
 0x163   : > { %v345_v42 = vadd.f32 %v343_v40, %v341_v38 }
 0x164   : > { %v338_v45 = vsub.f32 %v318_v41, %v336_v43 }
 0x165   : > { %348 = vst.msk [vmem:[#allocation2] sm:$0xff] %vm347_vm3, %v345_v42  ;;  %361 = sbr.rel (%p559_p4) target bundleno = 760 (0x2f8), region = 48 }
 0x166   : > { %v344_v46 = vsel %vm340_vm2, %v338_v45, 0.0 }
 0x167   : > { %v346_v47 = vadd.f32 %v344_v46, %v342_v44 }
 0x169   : > { %349 = vst.msk [vmem:[#allocation2 + $0x8] sm:$0xff] %vm347_vm3, %v346_v47 }
 0x16a   : > { %v390_v48 = vld [vmem:[%s848_s2] sm:$0x77]  ;;  %vm396_vm6 = vcmask 1042432   ;;  %v376_v6 = vld [vmem:[#allocation3] sm:$0xff]  ;;  %v377_v7 = vld [vmem:[#allocation3 + $0x8] sm:$0xff]  ;;  %vm440_vm11 = vcmask 2048  }
 0x16b   : > { %v391_v49 = vld [vmem:[#allocation4] sm:$0x77]  ;;  %v402_v50 = vmul.f32 %v390_v48, %v390_v48  ;;  %v378_v8 = vsel %vm347_vm3, %v376_v6, 0.0  ;;  %v379_v9 = vsel %vm347_vm3, %v377_v7, 0.0  ;;  %vm457_vm12 = vcmp.eq.s32.totalorder %v801_v21, 2 }
 0x16c   : > { %v418_v51 = vmul.f32 %v391_v49, %v391_v49  ;;  %v392_v52 = vmul.f32 %v391_v49, %v390_v48  ;;  %v362_v1 = vld [vmem:[#allocation2] sm:$0xff]  ;;  %v380_v10 = vadd.f32 %v379_v9, %v378_v8  ;;  %vm456_vm13 = vcmp.eq.s32.totalorder %v801_v21, 1 }
 0x16d   : > { %v404_v53 = vcombine.high %v402_v50, %v402_v50  ;;  %v406_v54 = vsel %vm396_vm6, %v402_v50, 0.0  ;;  %v364_v3 = vsel %vm347_vm3, %v362_v1, 0.0  ;;  %vm455_vm14 = vcmp.eq.s32.totalorder %v801_v21, 0 }
 0x16e   : > { %v420_v55 = vcombine.high %v418_v51, %v418_v51  ;;  %v394_v56 = vcombine.high %v392_v52, %v392_v52  ;;  %v397_v57 = vsel %vm396_vm6, %v392_v52, 0.0  ;;  %v422_v59 = vsel %vm396_vm6, %v418_v51, 0.0 }
 0x16f   : > { %v407_v58 = vsel %vm396_vm6, %v404_v53, 0.0 }
 0x170   : > { %v423_v60 = vsel %vm396_vm6, %v420_v55, 0.0  ;;  %v408_v61 = vadd.f32 %v407_v58, %v406_v54  ;;  %v398_v62 = vsel %vm396_vm6, %v394_v56, 0.0  ;;  %v363_v2 = vld [vmem:[#allocation2 + $0x8] sm:$0xff] }
 0x171   : > { %v399_v63 = vadd.f32 %v398_v62, %v397_v57  ;;  %v424_v0 = vadd.f32 %v423_v60, %v422_v59  ;;  %v365_v4 = vsel %vm347_vm3, %v363_v2, 0.0 }
 0x172   : > { %409 = vadd.xlane.f32.xlu0 %v408_v61  ;;  %v366_v5 = vadd.f32 %v365_v4, %v364_v3 }
 0x173   : > { %400 = vadd.xlane.f32.xlu1 %v399_v63 }
 0x176   : > { %425 = vadd.xlane.f32.xlu0 %v424_v0 }
 0x177   : > { %367 = vadd.xlane.f32.xlu1 %v366_v5 }
 0x17a   : > { %381 = vadd.xlane.f32.xlu0 %v380_v10 }
 0x1fb   : > { %v410_v11 = vpop.xlane.xlu0 %409 }
 0x1fc   : > { %626 = vrsqrt.f32 %v410_v11  ;;  %vm413_vm7 = vcmp.eq.f32.partialorder %v410_v11, inf  ;;  %v416_v18 = vand.u32 2147483648, %v410_v11  ;;  %vm415_vm9 = vcmp.eq.f32.partialorder %v410_v11, 0.0  ;;  %v401_v26 = vpop.xlane.xlu1 %400 }
 0x1ff   : > { %v426_v12 = vpop.xlane.xlu0 %425 }
 0x200   : > { %628 = vrsqrt.f32 %v426_v12  ;;  %vm429_vm8 = vcmp.eq.f32.partialorder %v426_v12, inf  ;;  %v432_v19 = vand.u32 2147483648, %v426_v12  ;;  %vm431_vm10 = vcmp.eq.f32.partialorder %v426_v12, 0.0  ;;  %v368_v27 = vpop.xlane.xlu1 %367 }
 0x201   : > { %v369_v29 = vrot.slane %v368_v27, 4 }
 0x203   : > { %v370_v32 = vadd.f32 %v369_v29, %v368_v27  ;;  %v382_v35 = vpop.xlane.xlu0 %381 }
 0x204   : > { %v383_v36 = vrot.slane %v382_v35, 4 }
 0x205   : > { %v371_v34 = vrot.slane %v370_v32, 2 }
 0x206   : > { %v384_v37 = vadd.f32 %v383_v36, %v382_v35 }
 0x207   : > { %v372_v38 = vadd.f32 %v371_v34, %v370_v32 }
 0x208   : > { %v385_v39 = vrot.slane %v384_v37, 2 }
 0x209   : > { %v627_v13 = vpop.eup %626  ;;  %v373_v40 = vrot.slane %v372_v38, 1 }
 0x20a   : > { %v412_v14 = vmul.f32 %v627_v13, %v410_v11  ;;  %v386_v41 = vadd.f32 %v385_v39, %v384_v37 }
 0x20b   : > { %v374_v42 = vadd.f32 %v373_v40, %v372_v38 }
 0x20c   : > { %v414_v16 = vsel %vm413_vm7, %v410_v11, %v412_v14  ;;  %v387_v43 = vrot.slane %v386_v41, 1 }
 0x20d   : > { %v629_v15 = vpop.eup %628  ;;  %v417_v22 = vsel %vm415_vm9, %v416_v18, %v414_v16  ;;  %564 = vpush %v374_v42 }
 0x20e   : > { %v428_v17 = vmul.f32 %v629_v15, %v426_v12  ;;  %v388_v44 = vadd.f32 %v387_v43, %v386_v41 }
 0x210   : > { %v430_v20 = vsel %vm429_vm8, %v426_v12, %v428_v17  ;;  %566 = vpush %v388_v44 }
 0x211   : > { %v433_v23 = vsel %vm431_vm10, %v432_v19, %v430_v20 }
 0x212   : > { %v434_v24 = vmul.f32 %v433_v23, %v417_v22 }
 0x214   : > { %v435_v25 = vadd.f32 1e-12, %v434_v24 }
 0x216   : > { %630 = vrcp.f32 %v435_v25 }
 0x223   : > { %v631_v28 = vpop.eup %630 }
 0x224   : > { %v437_v30 = vmul.f32 %v631_v28, %v401_v26 }
 0x226   : > { %v439_v31 = vsub.f32 1.0, %v437_v30 }
 0x228   : > { %v441_v33 = vsel %vm440_vm11, %v439_v31, 0.0 }
 0x229   : > { %442 = vadd.xlane.f32.xlu1 %v441_v33 }
 0x23e   : > { %s565_s13 = spop %564 }
 0x23f   : > { %v462_v55 = vstv %s565_s13 }
 0x241   : > { %s567_s14 = spop %566 }
 0x242   : > { %v460_v53 = vstv %s567_s14 }
 0x2b2   : > { %v443_v45 = vpop.xlane.xlu1 %442 }
 0x2b3   : > { %v444_v46 = vrot.slane %v443_v45, 4 }
 0x2b5   : > { %v445_v47 = vadd.f32 %v444_v46, %v443_v45 }
 0x2b7   : > { %v446_v48 = vrot.slane %v445_v47, 2 }
 0x2b9   : > { %v447_v49 = vadd.f32 %v446_v48, %v445_v47 }
 0x2bb   : > { %v448_v50 = vrot.slane %v447_v49, 1 }
 0x2bd   : > { %v449_v51 = vadd.f32 %v448_v50, %v447_v49 }
 0x2bf   : > { %568 = vpush %v449_v51 }
 0x2f0   : > { %s569_s15 = spop %568 }
 0x2f1   : > { %s453_s20 = smul.f32 0.33333334, %s569_s15 }
 0x2f3   : > { %v458_v52 = vstv %s453_s20 }
 0x2f4   : > { %v459_v54 = vsel %vm457_vm12, %v458_v52, 0.0 }
 0x2f5   : > { %v461_v56 = vsel %vm456_vm13, %v460_v53, %v459_v54 }
 0x2f6   : > { %v463_v57 = vsel %vm455_vm14, %v462_v55, %v461_v56 }
 0x2f7   : > { %464 = vst [vmem:[#allocation7] sm:$0xff] %v463_v57 }
 0x2f8 PF: > { %p822_p5 = scmp.eq.s32.totalorder %s548_s18, 1  ;;  %s719_s22 = smov [#allocation7]  }
 0x2f9   : > { %s474_s23 = sshll.u32 %s719_s22, 4  ;;  %s475_s23 = int_to_ptr.vmem [resolvable:$true] %s474_s23 }
 0x2fa   : > { %s658_s24 = scalar_lea.vmem %s475_s23, 128  ;;  %p665_p9 = scmp.lt.s32.totalorder %s475_s23, %s475_s23 }
 0x2fb   : > { %p659_p6 = scmp.ne.s32.totalorder %s475_s23, %s658_s24  ;;  %p666_p10 = scmp.lt.s32.totalorder %s658_s24, %s658_s24 }
 0x2fd   : > { %p660_p7 = pnand %p659_p6, %p822_p5  ;;  %p667_p11 = por %p666_p10, %p665_p9 }
 0x2ff   : > { %p661_p8 = pneg %p660_p7 }
 0x301   : > { %p668_p12 = pnand %p667_p11, %p661_p8 }
 0x303   : > { %671 = shalt.err (!%p668_p12)
}
 0x304   : > { %575 = dma.vmem_to_hbm [thread:$0]  (%p822_p5), %s475_s23, 128, %s850_s4, [#allocation6]  }
 0x305   : > { %699 = dma.done.wait (%p822_p5), [#allocation6], 128  }
 0x306   : > { %701 = vsyncadd (%p822_p5), [#allocation6], 4294967168 }
 0x307 PF: > { %s16_s17 = sadd.s32 1, %s712_s17   ;;  %s854_s15 = smov %s708_s16 }
 0x308   : > { %p13_p13 = scmp.ge.s32.totalorder %s16_s17, 4   ;;  %s855_s16 = smov %s857_s19 }
 0x30a   :  { %15 = sbr.rel (!%p13_p13) target bundleno = 3 (0x3), region = 80 }
 0x30f   :  { %487 = vsyncpa [#allocation5], 1 }
 0x310   :  { %489 = vsyncpa [#allocation5 + $0x1], 1 }
 0x311   :  { %490 = vsyncpa [#allocation6], 1 }
 0x312   :  { %492 = vsyncpa [#allocation6 + $0x1], 1 }

</bundles_post_ra>
